<compile_context>
chip_gen: v7x
topology: tpu7x:2x2x1
jax: 0.10.0
libtpu: 0.0.40
codegen_flags: <defaults>
</compile_context>

<pallas_src>
import functools

import jax
import jax.numpy as jnp
from jax.experimental import pallas as pl
from jax.experimental.pallas import tpu as pltpu


def _round_up(n, m):
    return ((n + m - 1) // m) * m


def _pad2(a, shape, dtype):
    """Zero-pad a 2-D array up to `shape` and cast to `dtype` (fused by XLA into one pass)."""
    a = a.astype(dtype)
    if tuple(a.shape) == tuple(shape):
        return a
    return jnp.zeros(shape, dtype).at[: a.shape[0], : a.shape[1]].set(a)


def _gconv_kernel(adj_ref, xw_ref, b_ref, out_ref, acc_ref, *,
                  apply_relu, deg_col, tk, xw_resident):
    # adj_ref: (tm, tk)                 bf16 raw 0/1 adjacency tile (dst x src)
    # xw_ref : (tk, F) or (n_src_pad,F) bf16 XW pre-scaled by D_src^-1/2; column `deg_col`
    #                                   holds 1.0, remaining padded columns are 0.
    # b_ref  : (1, F)                   f32 bias (zero in padded columns)
    # out_ref: (tm, F)
    # acc_ref: (tm, F)                  f32 accumulator, resident across the src (K) axis
    k = pl.program_id(1)

    @pl.when(k == 0)
    def _():
        acc_ref[...] = jnp.zeros_like(acc_ref)

    if xw_resident:
        start = pl.multiple_of(k * tk, tk)
        xw = xw_ref[pl.ds(start, tk), :]
    else:
        xw = xw_ref[...]

    # bf16 x bf16 -> f32 on the MXU.  Column `deg_col` of xw is all-ones, so the same matmul
    # accumulates the exact dst in-degree (adjacency values are 0/1, exact in bf16).
    acc_ref[...] += jnp.dot(adj_ref[...], xw, preferred_element_type=jnp.float32)

    @pl.when(k == pl.num_programs(1) - 1)
    def _():
        acc = acc_ref[...]
        col = jax.lax.broadcasted_iota(jnp.int32, acc.shape, 1)
        deg = jnp.sum(jnp.where(col == deg_col, acc, 0.0), axis=-1, keepdims=True)
        dscale = jax.lax.rsqrt(jnp.maximum(deg, 1.0))   # DGL: in_degrees().clamp(min=1) ** -0.5
        h = acc * dscale + b_ref[...]
        if apply_relu:
            h = jnp.maximum(h, 0.0)
        out_ref[...] = h.astype(out_ref.dtype)


def graph_conv_pallas(adj, x, w, b, *, apply_relu, out_dtype=jnp.float32, tm=256, tk=2048):
    """One DGL-style GraphConv (norm='both', bias=True) layer as a fused Pallas kernel.

    `adj` is the raw dense (n_dst, n_src) MFG adjacency (0/1); normalization is fused.
    `x` may have extra rows/columns (e.g. a previous layer's padded output) — only
    x[:n_src, :fin] is used.  Returns (n_dst, fout_pad); slice [:, :fout] for the logical
    result (column `fout` carries fused-degree byproducts, further columns are padding).
    """
    n_dst, n_src = adj.shape
    fin, fout = w.shape
    assert x.shape[0] >= n_src and x.shape[1] >= fin, (x.shape, n_src, fin)

    # --- src-side normalization + reassociated feature/weight product (small, one HBM pass) ---
    deg_src = jnp.maximum(jnp.sum(adj, axis=0), 1.0)                  # out-degree, clamp >= 1
    src_scale = jax.lax.rsqrt(deg_src)                                # (n_src,)
    xw = (x[:n_src, :fin].astype(jnp.float32) * src_scale[:, None]) @ w.astype(jnp.float32)
    # Spare column of ones: the aggregation matmul also produces the dst in-degree for free.
    xw_aug = jnp.concatenate([xw, jnp.ones((n_src, 1), jnp.float32)], axis=1)
    deg_col = fout

    # --- tile / padding geometry (lane = 128; bf16 sublane pack = 16) ---
    dst16 = _round_up(n_dst, 16)
    tm_eff = min(tm, dst16)
    if tm_eff == dst16 and dst16 >= 32:
        tm_eff = _round_up(pl.cdiv(dst16, 2), 16)      # >= 2 dst tiles -> both v7x TCs get work
    n_dst_pad = _round_up(n_dst, tm_eff)
    tk_eff = min(tk, _round_up(n_src, 128))
    n_src_pad = _round_up(n_src, tk_eff)
    fout_pad = _round_up(fout + 1, 128)                # +1 spare column carries the in-degree

    adj_p = _pad2(adj, (n_dst_pad, n_src_pad), jnp.bfloat16)          # 0/1 -> exact in bf16
    xw_p = _pad2(xw_aug, (n_src_pad, fout_pad), jnp.bfloat16)
    b_p = _pad2(b.reshape(1, -1), (1, fout_pad), jnp.float32)

    # Keep the narrow XW matrix fully VMEM-resident when small (DMA'd once instead of once per
    # dst row-tile); threshold keeps double-buffered allocations well inside v7x's 64 MiB VMEM.
    xw_bytes = n_src_pad * fout_pad * 2
    xw_resident = xw_bytes <= 12 * 1024 * 1024
    if xw_resident:
        xw_spec = pl.BlockSpec((n_src_pad, fout_pad), lambda i, k: (0, 0))
    else:
        xw_spec = pl.BlockSpec((tk_eff, fout_pad), lambda i, k: (k, 0))

    out_bytes = jnp.dtype(out_dtype).itemsize
    vmem_need = (2 * tm_eff * tk_eff * 2                               # adj tiles (double-buffered)
                 + 2 * (n_src_pad if xw_resident else tk_eff) * fout_pad * 2
                 + 2 * tm_eff * fout_pad * out_bytes                   # output tiles
                 + tm_eff * fout_pad * 4                               # f32 accumulator
                 + 2 * fout_pad * 4)                                   # bias
    vmem_limit = int(min(48 * 2 ** 20, max(2 * vmem_need, 16 * 2 ** 20)))

    kernel = functools.partial(_gconv_kernel, apply_relu=apply_relu,
                               deg_col=deg_col, tk=tk_eff, xw_resident=xw_resident)
    out = pl.pallas_call(
        kernel,
        out_shape=jax.ShapeDtypeStruct((n_dst_pad, fout_pad), out_dtype),
        grid_spec=pltpu.PrefetchScalarGridSpec(
            num_scalar_prefetch=0,
            grid=(n_dst_pad // tm_eff, n_src_pad // tk_eff),
            in_specs=[
                pl.BlockSpec((tm_eff, tk_eff), lambda i, k: (i, k)),   # adjacency tile
                xw_spec,                                               # scaled XW (+ ones column)
                pl.BlockSpec((1, fout_pad), lambda i, k: (0, 0)),      # bias
            ],
            out_specs=pl.BlockSpec((tm_eff, fout_pad), lambda i, k: (i, 0)),
            scratch_shapes=[pltpu.VMEM((tm_eff, fout_pad), jnp.float32)],
        ),
        compiler_params=pltpu.CompilerParams(
            dimension_semantics=("parallel", "arbitrary"),
            vmem_limit_bytes=vmem_limit,
        ),
    )(adj_p, xw_p, b_p)
    return out[:n_dst]


def gcn_forward(mfg_adjs, x, params):
    """Reproduces GCN.forward(mfgs, x)."""
    adj0, adj1 = mfg_adjs
    (w0, b0), (w1, b1) = params
    # h_dst = x[:n_dst0] in the PyTorch forward is unused by the GraphConv output path.
    h = graph_conv_pallas(adj0, x, w0, b0, apply_relu=True, out_dtype=jnp.bfloat16)
    h = graph_conv_pallas(adj1, h, w1, b1, apply_relu=False, out_dtype=jnp.float32)
    return h[:, : w1.shape[1]]                                          # strip lane padding


def _normalize_adj_ref(adj):
    deg_src = jnp.maximum(adj.sum(axis=0), 1.0)
    deg_dst = jnp.maximum(adj.sum(axis=1), 1.0)
    return adj * (deg_dst[:, None] ** -0.5) * (deg_src[None, :] ** -0.5)


def gcn_reference(mfg_adjs, x, params):
    """Pure-JAX f32 reference for correctness checking."""
    adj0, adj1 = mfg_adjs
    (w0, b0), (w1, b1) = params
    h = jnp.maximum(_normalize_adj_ref(adj0) @ x @ w0 + b0, 0.0)
    h = _normalize_adj_ref(adj1) @ h @ w1 + b1
    return h


if __name__ == "__main__":
    key = jax.random.PRNGKey(0)

    # Small synthetic problem.
    in_size, hid_size, out_size = 8, 16, 4
    n_src0, n_dst0 = 64, 32   # MFG block 0: 64 src nodes -> 32 dst nodes
    n_src1, n_dst1 = 32, 16   # MFG block 1: 32 src nodes -> 16 dst nodes
    assert n_src1 == n_dst0

    k_adj0, k_adj1, k_x, k_w0, k_w1 = jax.random.split(key, 5)

    # Random sparse-ish dense adjacency (dst x src), ~20% edges.
    adj0 = (jax.random.uniform(k_adj0, (n_dst0, n_src0)) < 0.2).astype(jnp.float32)
    adj1 = (jax.random.uniform(k_adj1, (n_dst1, n_src1)) < 0.2).astype(jnp.float32)

    # Node features for the 64 src nodes of the first MFG.
    x = jax.random.normal(k_x, (n_src0, in_size), dtype=jnp.float32)

    # Deterministic parameter init (GraphConv: xavier-uniform weight, zero bias).
    def xavier_uniform(k, fan_in, fan_out):
        limit = (6.0 / (fan_in + fan_out)) ** 0.5
        return jax.random.uniform(k, (fan_in, fan_out), minval=-limit, maxval=limit,
                                  dtype=jnp.float32)

    w0 = xavier_uniform(k_w0, in_size, hid_size)
    b0 = jnp.zeros((hid_size,), dtype=jnp.float32)
    w1 = xavier_uniform(k_w1, hid_size, out_size)
    b1 = jnp.zeros((out_size,), dtype=jnp.float32)
    params = ((w0, b0), (w1, b1))

    gcn = jax.jit(gcn_forward)
    out = gcn((adj0, adj1), x, params)
    out = jax.block_until_ready(out)

    ref = gcn_reference((adj0, adj1), x, params)
    assert out.shape == (n_dst1, out_size), out.shape
    # bf16 feature/adjacency streaming + bf16 inter-layer activations -> relaxed tolerance.
    assert jnp.allclose(out, ref, atol=3e-2, rtol=3e-2), "mismatch vs reference"

    print("KERNEL_OK")
</pallas_src>

<mosaic_0001>
module attributes {stable_mosaic.version = 11 : i64} {
  func.func @_gconv_kernel(%arg0: i32, %arg1: i32, %arg2: memref<16x128xbf16, #tpu.memory_space<vmem>>, %arg3: memref<128x128xbf16, #tpu.memory_space<vmem>>, %arg4: memref<1x128xf32, #tpu.memory_space<vmem>>, %arg5: memref<16x128xbf16, #tpu.memory_space<vmem>>, %arg6: memref<16x128xf32, #tpu.memory_space<vmem>>) attributes {dimension_semantics = [#tpu.dimension_semantics<parallel>, #tpu.dimension_semantics<arbitrary>], iteration_bounds = array<i64: 2, 1>, scalar_prefetch = 0 : i64, scratch_operands = 1 : i64, tpu.core_type = #tpu.core_type<tc>, window_params = [{transform_indices = @transform_0, window_bounds = array<i64: 16, 128>}, {pipeline_mode = #tpu.pipeline_mode<synchronous>, transform_indices = @transform_1, window_bounds = array<i64: 128, 128>}, {pipeline_mode = #tpu.pipeline_mode<synchronous>, transform_indices = @transform_2, window_bounds = array<i64: 1, 128>}, {transform_indices = @transform_3, window_bounds = array<i64: 16, 128>}]} {
    %c0_i32 = arith.constant 0 : i32
    %0 = arith.cmpi eq, %arg1, %c0_i32 : i32
    %1 = arith.extui %0 : i1 to i32
    %c0_i32_0 = arith.constant 0 : i32
    %2 = arith.cmpi ne, %1, %c0_i32_0 : i32
    scf.if %2 {
      %cst_9 = arith.constant 0.000000e+00 : f32
      %15 = vector.broadcast %cst_9 : f32 to vector<16x128xf32>
      %c0_10 = arith.constant 0 : index
      %c0_11 = arith.constant 0 : index
      %16 = vector.load %arg6[%c0_10, %c0_11] : memref<16x128xf32, #tpu.memory_space<vmem>>, vector<16x128xf32>
      tpu.vector_store %arg6[%c0_10, %c0_11], %15 {strides = array<i32>} : memref<16x128xf32, #tpu.memory_space<vmem>>, vector<16x128xf32>,
    } else {
    }
    %c128_i32 = arith.constant 128 : i32
    %3 = arith.muli %arg1, %c128_i32 : i32
    %4 = tpu.assume_multiple %3, 128 : i32
    %5 = arith.index_cast %4 : i32 to index
    %c0 = arith.constant 0 : index
    %6 = vector.load %arg3[%5, %c0] : memref<128x128xbf16, #tpu.memory_space<vmem>>, vector<128x128xbf16>
    %c0_1 = arith.constant 0 : index
    %c0_2 = arith.constant 0 : index
    %7 = vector.load %arg6[%c0_1, %c0_2] : memref<16x128xf32, #tpu.memory_space<vmem>>, vector<16x128xf32>
    %c0_3 = arith.constant 0 : index
    %c0_4 = arith.constant 0 : index
    %8 = vector.load %arg2[%c0_3, %c0_4] : memref<16x128xbf16, #tpu.memory_space<vmem>>, vector<16x128xbf16>
    %cst = arith.constant dense<0.000000e+00> : vector<16x128xf32>
    %9 = tpu.matmul %8, %6, %cst {dimension_numbers = #tpu.dot_dimension_numbers<[1], [0], [0], [1], [0, 0, 1, 1], [], []>} : vector<16x128xbf16>, vector<128x128xbf16>, vector<16x128xf32> -> vector<16x128xf32>
    %10 = arith.addf %7, %9 : vector<16x128xf32>
    %c0_5 = arith.constant 0 : index
    %c0_6 = arith.constant 0 : index
    %11 = vector.load %arg6[%c0_5, %c0_6] : memref<16x128xf32, #tpu.memory_space<vmem>>, vector<16x128xf32>
    tpu.vector_store %arg6[%c0_5, %c0_6], %10 {strides = array<i32>} : memref<16x128xf32, #tpu.memory_space<vmem>>, vector<16x128xf32>,
    %c0_i32_7 = arith.constant 0 : i32
    %12 = arith.cmpi eq, %arg1, %c0_i32_7 : i32
    %13 = arith.extui %12 : i1 to i32
    %c0_i32_8 = arith.constant 0 : i32
    %14 = arith.cmpi ne, %13, %c0_i32_8 : i32
    scf.if %14 {
      %c0_9 = arith.constant 0 : index
      %c0_10 = arith.constant 0 : index
      %15 = vector.load %arg6[%c0_9, %c0_10] : memref<16x128xf32, #tpu.memory_space<vmem>>, vector<16x128xf32>
      %16 = tpu.iota {dimensions = array<i32: 1>} : vector<16x128xi32>
      %c16_i32 = arith.constant 16 : i32
      %17 = vector.broadcast %c16_i32 : i32 to vector<16x128xi32>
      %18 = arith.cmpi eq, %16, %17 : vector<16x128xi32>
      %cst_11 = arith.constant 0.000000e+00 : f32
      %19 = vector.broadcast %cst_11 : f32 to vector<16x128xf32>
      %20 = arith.select %18, %15, %19 : vector<16x128xi1>, vector<16x128xf32>
      %cst_12 = arith.constant dense<0.000000e+00> : vector<16xf32>
      %21 = vector.multi_reduction <add>, %20, %cst_12 [1] : vector<16x128xf32> to vector<16xf32>
      %22 = vector.shape_cast %21 : vector<16xf32> to vector<16x1xf32>
      %cst_13 = arith.constant 1.000000e+00 : f32
      %23 = vector.broadcast %cst_13 : f32 to vector<16x1xf32>
      %24 = arith.maximumf %22, %23 : vector<16x1xf32>
      %25 = math.rsqrt %24 : vector<16x1xf32>
      %26 = vector.broadcast %25 : vector<16x1xf32> to vector<16x128xf32>
      %27 = arith.mulf %15, %26 : vector<16x128xf32>
      %c0_14 = arith.constant 0 : index
      %c0_15 = arith.constant 0 : index
      %28 = vector.load %arg4[%c0_14, %c0_15] : memref<1x128xf32, #tpu.memory_space<vmem>>, vector<1x128xf32>
      %29 = vector.broadcast %28 : vector<1x128xf32> to vector<16x128xf32>
      %30 = arith.addf %27, %29 : vector<16x128xf32>
      %cst_16 = arith.constant 0.000000e+00 : f32
      %31 = vector.broadcast %cst_16 : f32 to vector<16x128xf32>
      %32 = arith.maximumf %30, %31 : vector<16x128xf32>
      %33 = arith.truncf %32 : vector<16x128xf32> to vector<16x128xbf16>
      %c0_17 = arith.constant 0 : index
      %c0_18 = arith.constant 0 : index
      %34 = vector.load %arg5[%c0_17, %c0_18] : memref<16x128xbf16, #tpu.memory_space<vmem>>, vector<16x128xbf16>
      tpu.vector_store %arg5[%c0_17, %c0_18], %33 {strides = array<i32>} : memref<16x128xbf16, #tpu.memory_space<vmem>>, vector<16x128xbf16>,
    } else {
    }
    return
  }
  func.func @transform_0(%arg0: i32, %arg1: i32) -> (i32, i32) {
    %c0_i32 = arith.constant 0 : i32
    return %arg0, %arg1 : i32, i32
  }
  func.func @transform_1(%arg0: i32, %arg1: i32) -> (i32, i32) {
    %c0_i32 = arith.constant 0 : i32
    %c0_i32_0 = arith.constant 0 : i32
    %c0_i32_1 = arith.constant 0 : i32
    return %c0_i32, %c0_i32_0 : i32, i32
  }
  func.func @transform_2(%arg0: i32, %arg1: i32) -> (i32, i32) {
    %c0_i32 = arith.constant 0 : i32
    %c0_i32_0 = arith.constant 0 : i32
    %c0_i32_1 = arith.constant 0 : i32
    return %c0_i32, %c0_i32_0 : i32, i32
  }
  func.func @transform_3(%arg0: i32, %arg1: i32) -> (i32, i32) {
    %c0_i32 = arith.constant 0 : i32
    %c0_i32_0 = arith.constant 0 : i32
    return %arg0, %c0_i32 : i32, i32
  }
}

module attributes {stable_mosaic.version = 11 : i64} {
  func.func @_gconv_kernel(%arg0: i32, %arg1: i32, %arg2: memref<16x128xbf16, #tpu.memory_space<vmem>>, %arg3: memref<128x128xbf16, #tpu.memory_space<vmem>>, %arg4: memref<1x128xf32, #tpu.memory_space<vmem>>, %arg5: memref<16x128xf32, #tpu.memory_space<vmem>>, %arg6: memref<16x128xf32, #tpu.memory_space<vmem>>) attributes {dimension_semantics = [#tpu.dimension_semantics<parallel>, #tpu.dimension_semantics<arbitrary>], iteration_bounds = array<i64: 1, 1>, scalar_prefetch = 0 : i64, scratch_operands = 1 : i64, tpu.core_type = #tpu.core_type<tc>, window_params = [{transform_indices = @transform_0, window_bounds = array<i64: 16, 128>}, {pipeline_mode = #tpu.pipeline_mode<synchronous>, transform_indices = @transform_1, window_bounds = array<i64: 128, 128>}, {pipeline_mode = #tpu.pipeline_mode<synchronous>, transform_indices = @transform_2, window_bounds = array<i64: 1, 128>}, {transform_indices = @transform_3, window_bounds = array<i64: 16, 128>}]} {
    %c0_i32 = arith.constant 0 : i32
    %0 = arith.cmpi eq, %arg1, %c0_i32 : i32
    %1 = arith.extui %0 : i1 to i32
    %c0_i32_0 = arith.constant 0 : i32
    %2 = arith.cmpi ne, %1, %c0_i32_0 : i32
    scf.if %2 {
      %cst_9 = arith.constant 0.000000e+00 : f32
      %15 = vector.broadcast %cst_9 : f32 to vector<16x128xf32>
      %c0_10 = arith.constant 0 : index
      %c0_11 = arith.constant 0 : index
      %16 = vector.load %arg6[%c0_10, %c0_11] : memref<16x128xf32, #tpu.memory_space<vmem>>, vector<16x128xf32>
      tpu.vector_store %arg6[%c0_10, %c0_11], %15 {strides = array<i32>} : memref<16x128xf32, #tpu.memory_space<vmem>>, vector<16x128xf32>,
    } else {
    }
    %c128_i32 = arith.constant 128 : i32
    %3 = arith.muli %arg1, %c128_i32 : i32
    %4 = tpu.assume_multiple %3, 128 : i32
    %5 = arith.index_cast %4 : i32 to index
    %c0 = arith.constant 0 : index
    %6 = vector.load %arg3[%5, %c0] : memref<128x128xbf16, #tpu.memory_space<vmem>>, vector<128x128xbf16>
    %c0_1 = arith.constant 0 : index
    %c0_2 = arith.constant 0 : index
    %7 = vector.load %arg6[%c0_1, %c0_2] : memref<16x128xf32, #tpu.memory_space<vmem>>, vector<16x128xf32>
    %c0_3 = arith.constant 0 : index
    %c0_4 = arith.constant 0 : index
    %8 = vector.load %arg2[%c0_3, %c0_4] : memref<16x128xbf16, #tpu.memory_space<vmem>>, vector<16x128xbf16>
    %cst = arith.constant dense<0.000000e+00> : vector<16x128xf32>
    %9 = tpu.matmul %8, %6, %cst {dimension_numbers = #tpu.dot_dimension_numbers<[1], [0], [0], [1], [0, 0, 1, 1], [], []>} : vector<16x128xbf16>, vector<128x128xbf16>, vector<16x128xf32> -> vector<16x128xf32>
    %10 = arith.addf %7, %9 : vector<16x128xf32>
    %c0_5 = arith.constant 0 : index
    %c0_6 = arith.constant 0 : index
    %11 = vector.load %arg6[%c0_5, %c0_6] : memref<16x128xf32, #tpu.memory_space<vmem>>, vector<16x128xf32>
    tpu.vector_store %arg6[%c0_5, %c0_6], %10 {strides = array<i32>} : memref<16x128xf32, #tpu.memory_space<vmem>>, vector<16x128xf32>,
    %c0_i32_7 = arith.constant 0 : i32
    %12 = arith.cmpi eq, %arg1, %c0_i32_7 : i32
    %13 = arith.extui %12 : i1 to i32
    %c0_i32_8 = arith.constant 0 : i32
    %14 = arith.cmpi ne, %13, %c0_i32_8 : i32
    scf.if %14 {
      %c0_9 = arith.constant 0 : index
      %c0_10 = arith.constant 0 : index
      %15 = vector.load %arg6[%c0_9, %c0_10] : memref<16x128xf32, #tpu.memory_space<vmem>>, vector<16x128xf32>
      %16 = tpu.iota {dimensions = array<i32: 1>} : vector<16x128xi32>
      %c4_i32 = arith.constant 4 : i32
      %17 = vector.broadcast %c4_i32 : i32 to vector<16x128xi32>
      %18 = arith.cmpi eq, %16, %17 : vector<16x128xi32>
      %cst_11 = arith.constant 0.000000e+00 : f32
      %19 = vector.broadcast %cst_11 : f32 to vector<16x128xf32>
      %20 = arith.select %18, %15, %19 : vector<16x128xi1>, vector<16x128xf32>
      %cst_12 = arith.constant dense<0.000000e+00> : vector<16xf32>
      %21 = vector.multi_reduction <add>, %20, %cst_12 [1] : vector<16x128xf32> to vector<16xf32>
      %22 = vector.shape_cast %21 : vector<16xf32> to vector<16x1xf32>
      %cst_13 = arith.constant 1.000000e+00 : f32
      %23 = vector.broadcast %cst_13 : f32 to vector<16x1xf32>
      %24 = arith.maximumf %22, %23 : vector<16x1xf32>
      %25 = math.rsqrt %24 : vector<16x1xf32>
      %26 = vector.broadcast %25 : vector<16x1xf32> to vector<16x128xf32>
      %27 = arith.mulf %15, %26 : vector<16x128xf32>
      %c0_14 = arith.constant 0 : index
      %c0_15 = arith.constant 0 : index
      %28 = vector.load %arg4[%c0_14, %c0_15] : memref<1x128xf32, #tpu.memory_space<vmem>>, vector<1x128xf32>
      %29 = vector.broadcast %28 : vector<1x128xf32> to vector<16x128xf32>
      %30 = arith.addf %27, %29 : vector<16x128xf32>
      %c0_16 = arith.constant 0 : index
      %c0_17 = arith.constant 0 : index
      %31 = vector.load %arg5[%c0_16, %c0_17] : memref<16x128xf32, #tpu.memory_space<vmem>>, vector<16x128xf32>
      tpu.vector_store %arg5[%c0_16, %c0_17], %30 {strides = array<i32>} : memref<16x128xf32, #tpu.memory_space<vmem>>, vector<16x128xf32>,
    } else {
    }
    return
  }
  func.func @transform_0(%arg0: i32, %arg1: i32) -> (i32, i32) {
    %c0_i32 = arith.constant 0 : i32
    return %arg0, %arg1 : i32, i32
  }
  func.func @transform_1(%arg0: i32, %arg1: i32) -> (i32, i32) {
    %c0_i32 = arith.constant 0 : i32
    %c0_i32_0 = arith.constant 0 : i32
    %c0_i32_1 = arith.constant 0 : i32
    return %c0_i32, %c0_i32_0 : i32, i32
  }
  func.func @transform_2(%arg0: i32, %arg1: i32) -> (i32, i32) {
    %c0_i32 = arith.constant 0 : i32
    %c0_i32_0 = arith.constant 0 : i32
    %c0_i32_1 = arith.constant 0 : i32
    return %c0_i32, %c0_i32_0 : i32, i32
  }
  func.func @transform_3(%arg0: i32, %arg1: i32) -> (i32, i32) {
    %c0_i32 = arith.constant 0 : i32
    %c0_i32_0 = arith.constant 0 : i32
    return %arg0, %c0_i32 : i32, i32
  }
}

</mosaic_0001>

<bundles_post_ra>
// kernel: gcn_forward.3
= control target key start
LH: loop header
LB: loop body
LE: loop exit
PB: predicated region body
PF: predicated region fallthrough
CT: control target
= control target key end

     0   :  { %v236_v0 = vmov 0.0   ;;  %vm237_vm0 = vmmov 0   ;;  %v150_v10 = vlaneseq  ;;  %s294_s1 = inlined_call_operand.vmem [shape: bf16[128,128], index: 1, kind: input, shape index: {}]   ;;  %s295_s0 = inlined_call_operand.vmem [shape: bf16[16,128], index: 0, kind: input, shape index: {}]   ;;  %s296_s2 = inlined_call_operand.vmem [shape: f32[1,128], index: 2, kind: input, shape index: {}]   ;;  %s297_s3 = inlined_call_operand.vmem [shape: f32[16,128], index: 3, kind: output, shape index: {}]  }
   0x1   :  { %201 = vmatprep.subr.bf16.mxu0 %v236_v0  ;;  %v223_v1 = vld [vmem:[%s294_s1] sm:$0xff]   ;;  %217 = vmatprep.mubr.msk.bf16.mxu0 %vm237_vm0, %v236_v0  ;;  %v224_v2 = vld [vmem:[%s294_s1 + $0x8] sm:$0xff]   ;;  %v225_v3 = vld [vmem:[%s294_s1 + $0x10] sm:$0xff]  }
   0x2   :  { %202 = vmatpush3.bf16.msra.mxu0 %v223_v1  ;;  %v226_v4 = vld [vmem:[%s294_s1 + $0x18] sm:$0xff]   ;;  %v227_v5 = vld [vmem:[%s294_s1 + $0x20] sm:$0xff]   ;;  %v228_v6 = vld [vmem:[%s294_s1 + $0x28] sm:$0xff]   ;;  %v151_v11 = vand.u32 127, %v150_v10 }
   0x3   :  { %203 = vmatprep.subr.bf16.mxu0 %v236_v0  ;;  %v229_v7 = vld [vmem:[%s294_s1 + $0x30] sm:$0xff]   ;;  %v230_v8 = vld [vmem:[%s294_s1 + $0x38] sm:$0xff]   ;;  %v231_v9 = vld [vmem:[%s295_s0] sm:$0xff]  }
   0x4   :  { %vm152_vm1 = vcmp.eq.s32.totalorder %v151_v11, 4  ;;  %v191_v23 = vld [vmem:[%s296_s2] ss:$0 sm:$0xff] }
   0x6   :  { %204 = vmatpush3.bf16.msra.mxu0 %v224_v2 }
   0x7   :  { %205 = vmatprep.subr.bf16.mxu0 %v236_v0 }
   0xa   :  { %206 = vmatpush3.bf16.msra.mxu0 %v225_v3 }
   0xb   :  { %207 = vmatprep.subr.bf16.mxu0 %v236_v0 }
   0xe   :  { %208 = vmatpush3.bf16.msra.mxu0 %v226_v4 }
   0xf   :  { %209 = vmatprep.subr.bf16.mxu0 %v236_v0 }
  0x12   :  { %210 = vmatpush3.bf16.msra.mxu0 %v227_v5 }
  0x13   :  { %211 = vmatprep.subr.bf16.mxu0 %v236_v0 }
  0x16   :  { %212 = vmatpush3.bf16.msra.mxu0 %v228_v6 }
  0x17   :  { %213 = vmatprep.subr.bf16.mxu0 %v236_v0 }
  0x1a   :  { %214 = vmatpush3.bf16.msra.mxu0 %v229_v7 }
  0x1b   :  { %215 = vmatprep.subr.bf16.mxu0 %v236_v0 }
  0x1e   :  { %216 = vmatpush3.bf16.msra.mxu0 %v230_v8 }
  0x21   :  { %218 = vmatmul.mubr.bf16.vlgmr.msra.gmra.mrb[0].mxu0 %v231_v9 }
  0xf4   :  { %v134_v12 = vpop.f32.mrb[0].mxu0 }
  0xf5   :  { %v219_v13 = vpop.f32.mrb[1].mxu0  ;;  %v153_v14 = vsel %vm152_vm1, %v134_v12, 0.0 }
  0xf6   :  { %155 = vadd.xlane.f32.xlu0 %v153_v14  ;;  %v137_v15 = vpop.f32.mrb[2].mxu0 }
  0xf7   :  { %v220_v16 = vpop.f32.mrb[3].mxu0  ;;  %v154_v17 = vsel %vm152_vm1, %v137_v15, 0.0 }
  0xfa   :  { %157 = vadd.xlane.f32.xlu0 %v154_v17 }
 0x183   :  { %v156_v18 = vpop.xlane.xlu0 %155 }
 0x184   :  { %v159_v19 = vmax.f32 %v156_v18, 1.0 }
 0x186   :  { %232 = vrsqrt.f32 %v159_v19 }
 0x187   :  { %v158_v20 = vpop.xlane.xlu0 %157 }
 0x188   :  { %v160_v21 = vmax.f32 %v158_v20, 1.0 }
 0x18a   :  { %234 = vrsqrt.f32 %v160_v21 }
 0x190   :  { %v233_v22 = vpop.eup %232 }
 0x191   :  { %v163_v24 = vmul.f32 %v233_v22, %v134_v12 }
 0x193   :  { %v172_v25 = vadd.f32 %v191_v23, %v163_v24 }
 0x194   :  { %v235_v26 = vpop.eup %234 }
 0x195   :  { %174 = vst [vmem:[%s297_s3] sm:$0xff] %v172_v25  ;;  %v164_v27 = vmul.f32 %v235_v26, %v137_v15 }
 0x197   :  { %v173_v28 = vadd.f32 %v191_v23, %v164_v27 }
 0x199   :  { %175 = vst [vmem:[%s297_s3 + $0x8] sm:$0xff] %v173_v28 }

// kernel: gcn_forward.2
= control target key start
LH: loop header
LB: loop body
LE: loop exit
PB: predicated region body
PF: predicated region fallthrough
CT: control target
= control target key end

     0   :  { %s558_s12 = smov 0   ;;  %s560_s13 = smov 0   ;;  %s623_s0 = inlined_call_operand.vmem [shape: bf16[32,128], index: 0, kind: input, shape index: {}]   ;;  %s624_s1 = inlined_call_operand.vmem [shape: bf16[128,128], index: 1, kind: input, shape index: {}]   ;;  %s625_s2 = inlined_call_operand.vmem [shape: f32[1,128], index: 2, kind: input, shape index: {}]   ;;  %s626_s3 = inlined_call_operand.vmem [shape: bf16[32,128], index: 3, kind: output, shape index: {}]  }
   0x1   :  { %s562_s14 = smov 0  }
   0x2 LB: > { %s25_s15 = sadd.s32 1, %s530_s13  ;;  %p428_p0 = scmp.ge.s32.totalorder %s534_s14, 1  ;;  %s534_s14 = sphi %s562_s14, %s13_s14   ;;  %s530_s13 = sphi %s560_s13, %s628_s13   ;;  %s526_s12 = sphi %s558_s12, %s627_s12  }
   0x3   : > { %p27_p1 = scmp.ge.s32.totalorder %s25_s15, 2  ;;  %p155_p2 = scmp.lt.s32.totalorder %s534_s14, 3 }
   0x5   : > { %s630_s15 = smov (%p27_p1, %s25_s15), 0  ;;  %p156_p3 = pnand %p428_p0, %p155_p2 }
   0x6   : > { %v499_v0 = vld [vmem:[%s624_s1] sm:$0xff] (!%p156_p3)   ;;  %v536_v1 = vmov (!%p156_p3), 0.0   ;;  %v500_v2 = vld [vmem:[%s624_s1 + $0x8] sm:$0xff] (!%p156_p3)   ;;  %vm537_vm0 = vmmov (!%p156_p3), 0   ;;  %s429_s20 = sshll.u32 (!%p156_p3), %s526_s12, 1  ;;  %v501_v3 = vld [vmem:[%s624_s1 + $0x10] sm:$0xff] (!%p156_p3)   ;;  %v330_v10 = vlaneseq (!%p156_p3) }
   0x7   : > { %159 = sbr.rel (%p156_p3) target bundleno = 420 (0x1a4), region = 32  ;;  %453 = vmatprep.subr.bf16.mxu0 (!%p156_p3), %v536_v1  ;;  %469 = vmatprep.mubr.msk.bf16.mxu0 (!%p156_p3), %vm537_vm0, %v536_v1  ;;  %p182_p4 = scmp.lt.s32.totalorder (!%p156_p3), %s429_s20, 3  ;;  %v502_v4 = vld [vmem:[%s624_s1 + $0x18] sm:$0xff] (!%p156_p3)   ;;  %v503_v5 = vld [vmem:[%s624_s1 + $0x20] sm:$0xff] (!%p156_p3)   ;;  %v504_v6 = vld [vmem:[%s624_s1 + $0x28] sm:$0xff] (!%p156_p3)  }
   0x8   : > { %454 = vmatpush3.bf16.msra.mxu0 (!%p156_p3), %v499_v0  ;;  %v505_v7 = vld [vmem:[%s624_s1 + $0x30] sm:$0xff] (!%p156_p3)   ;;  %v506_v8 = vld [vmem:[%s624_s1 + $0x38] sm:$0xff] (!%p156_p3)   ;;  %v331_v11 = vand.u32 (!%p156_p3), 127, %v330_v10  ;;  %p190_p5 = scmp.lt.s32.totalorder (!%p156_p3), %s526_s12, 1  ;;  %v441_v24 = vld [vmem:[%s625_s2] ss:$0 sm:$0xff] (!%p156_p3) }
   0x9   : > { %455 = vmatprep.subr.bf16.mxu0 (!%p156_p3), %v536_v1 }
   0xa   : > { %vm332_vm1 = vcmp.eq.s32.totalorder (!%p156_p3), %v331_v11, 16 }
   0xc   : > { %456 = vmatpush3.bf16.msra.mxu0 (!%p156_p3), %v500_v2 }
   0xd   : > { %457 = vmatprep.subr.bf16.mxu0 (!%p156_p3), %v536_v1 }
   0xe   : > { %s632_s20 = smov (!%p182_p4, %s429_s20), 3  ;;  %s634_s12 = smov (!%p190_p5, %s526_s12), 1 }
   0xf   : > { %s430_s23 = sshll.u32 %s632_s20, 2  ;;  %s431_s16 = sshll.u32 %s634_s12, 3 }
  0x10   : > { %s188_s26 = scalar_lea.vmem %s623_s0, %s430_s23  ;;  %458 = vmatpush3.bf16.msra.mxu0 %v501_v3  ;;  %s193_s19 = scalar_lea.vmem %s626_s3, %s431_s16 }
  0x11   : > { %459 = vmatprep.subr.bf16.mxu0 %v536_v1  ;;  %v507_v9 = vld [vmem:[%s188_s26] sm:$0xff]  }
  0x14   : > { %460 = vmatpush3.bf16.msra.mxu0 %v502_v4 }
  0x15   : > { %461 = vmatprep.subr.bf16.mxu0 %v536_v1 }
  0x18   : > { %462 = vmatpush3.bf16.msra.mxu0 %v503_v5 }
  0x19   : > { %463 = vmatprep.subr.bf16.mxu0 %v536_v1 }
  0x1c   : > { %464 = vmatpush3.bf16.msra.mxu0 %v504_v6 }
  0x1d   : > { %465 = vmatprep.subr.bf16.mxu0 %v536_v1 }
  0x20   : > { %466 = vmatpush3.bf16.msra.mxu0 %v505_v7 }
  0x21   : > { %467 = vmatprep.subr.bf16.mxu0 %v536_v1 }
  0x24   : > { %468 = vmatpush3.bf16.msra.mxu0 %v506_v8 }
  0x27   : > { %470 = vmatmul.mubr.bf16.vlgmr.msra.gmra.mrb[0].mxu0 %v507_v9 }
  0xfa   : > { %v314_v12 = vpop.f32.mrb[0].mxu0 }
  0xfb   : > { %v471_v13 = vpop.f32.mrb[1].mxu0  ;;  %v333_v14 = vsel %vm332_vm1, %v314_v12, 0.0 }
  0xfc   : > { %335 = vadd.xlane.f32.xlu0 %v333_v14  ;;  %v317_v15 = vpop.f32.mrb[2].mxu0 }
  0xfd   : > { %v472_v16 = vpop.f32.mrb[3].mxu0  ;;  %v334_v17 = vsel %vm332_vm1, %v317_v15, 0.0 }
 0x100   : > { %337 = vadd.xlane.f32.xlu0 %v334_v17 }
 0x189   : > { %v336_v18 = vpop.xlane.xlu0 %335 }
 0x18a   : > { %v339_v19 = vmax.f32 %v336_v18, 1.0 }
 0x18c   : > { %508 = vrsqrt.f32 %v339_v19 }
 0x18d   : > { %v338_v20 = vpop.xlane.xlu0 %337 }
 0x18e   : > { %v340_v21 = vmax.f32 %v338_v20, 1.0 }
 0x190   : > { %510 = vrsqrt.f32 %v340_v21 }
 0x196   : > { %v509_v22 = vpop.eup %508 }
 0x197   : > { %v343_v23 = vmul.f32 %v509_v22, %v314_v12 }
 0x199   : > { %v352_v26 = vadd.f32 %v441_v24, %v343_v23 }
 0x19a   : > { %v511_v25 = vpop.eup %510 }
 0x19b   : > { %v344_v27 = vmul.f32 %v511_v25, %v317_v15  ;;  %v354_v29 = vmax.f32 %v352_v26, 0.0 }
 0x19d   : > { %v353_v28 = vadd.f32 %v441_v24, %v344_v27 }
 0x19f   : > { %v355_v30 = vmax.f32 %v353_v28, 0.0 }
 0x1a1   : > { %v356_v31 = vpack.c.bf16 %v355_v30, %v354_v29 }
 0x1a3   : > { %357 = vst [vmem:[%s193_s19] sm:$0xff] %v356_v31 }
 0x1a4 PF: > { %s13_s14 = sadd.s32 1, %s534_s14   ;;  %s627_s12 = smov %s530_s13 }
 0x1a5   : > { %p10_p6 = scmp.ge.s32.totalorder %s13_s14, 4   ;;  %s628_s13 = smov %s630_s15 }
 0x1a7   :  { %12 = sbr.rel (!%p10_p6) target bundleno = 2 (0x2), region = 71 }

</bundles_post_ra>
